<compile_context>
chip_gen: v6e
topology: v6e:2x2x1
jax: 0.10.0
libtpu: 0.0.40
codegen_flags: <defaults>
</compile_context>

<pallas_src>
import functools

import numpy as np
import jax
import jax.numpy as jnp
from jax.experimental import pallas as pl
from jax.experimental.pallas import tpu as pltpu


# ---------------------------------------------------------------------------
# host-side linear operators for adaptive avg-pool / linear upsample
# ---------------------------------------------------------------------------
def adaptive_pool_matrix(L, P):
    """(L, P) matrix M with  x @ M == AdaptiveAvgPool1d(P)(x)  along L."""
    M = np.zeros((L, P), np.float32)
    for i in range(P):
        s = (i * L) // P
        e = -((-(i + 1) * L) // P)          # ceil((i+1)*L/P)
        M[s:e, i] = 1.0 / (e - s)
    return M


def interp_matrix(P, L):
    """(P, L) matrix M with  y @ M == F.interpolate(y, L, 'linear',
    align_corners=False)  along the last axis."""
    M = np.zeros((P, L), np.float32)
    scale = P / L
    for j in range(L):
        src = max((j + 0.5) * scale - 0.5, 0.0)
        i0 = min(int(np.floor(src)), P - 1)
        i1 = min(i0 + 1, P - 1)
        lam = src - i0
        M[i0, j] += 1.0 - lam
        M[i1, j] += lam
    return M


def _bn_fold(bn, eps=1e-5):
    scale = bn["gamma"] / jnp.sqrt(bn["var"] + eps)
    bias = bn["beta"] - bn["mean"] * scale
    return scale, bias


# ---------------------------------------------------------------------------
# Pallas kernel: one lane-dense (C, TB*L) batch block per grid step
# ---------------------------------------------------------------------------
def sppm_kernel(x_ref, w_ref, pool_ref, up_ref, wc_ref, bbr_ref, bout_ref,
                o_ref, *, c_out, seq_len):
    f32 = jnp.float32
    bf16 = jnp.bfloat16

    x = x_ref[...]                                                  # (C_in, TB*L) bf16

    # (1) all three adaptive avg-pools in ONE matmul             -> (C_in, TB*7)
    pooled = jnp.dot(x, pool_ref[...], preferred_element_type=f32)

    # (2) all three 1x1 convs (BN scale pre-folded) in ONE matmul -> (3*C_out, TB*7)
    z = jnp.dot(w_ref[...], pooled.astype(bf16), preferred_element_type=f32)
    z = jnp.maximum(z + bbr_ref[...], 0.0)                          # +bias, ReLU

    # (3) each branch owns its own pooled columns (1 | 2 | 4 per batch element);
    #     select and sum the three C_out-row blocks               -> (C_out, TB*7)
    col = jax.lax.broadcasted_iota(jnp.int32, (c_out, z.shape[1]), 1) % 7
    y_cat = (jnp.where(col == 0, z[:c_out, :], 0.0)
             + jnp.where((col >= 1) & (col <= 2), z[c_out:2 * c_out, :], 0.0)
             + jnp.where(col >= 3, z[2 * c_out:, :], 0.0))

    # (4) all three linear upsamples + the fusion sum in ONE matmul -> (C_out, TB*L)
    fusion = jnp.dot(y_cat.astype(bf16), up_ref[...], preferred_element_type=f32)

    # (5) k=3 conv: build the l-1 / l+1 shifted copies with XLU lane rotations.
    #     The selects zero whatever was rotated in across batch-element (and
    #     grid-block) boundaries, and make the result independent of the
    #     hardware rotate convention by keeping whichever rotation actually
    #     brought the wanted neighbour.
    tbl = fusion.shape[1]
    pos = (jax.lax.broadcasted_iota(jnp.int32, fusion.shape, 1) % seq_len
           ).astype(f32)
    ra = pltpu.roll(fusion, 1, axis=1)
    pa = pltpu.roll(pos, 1, axis=1)
    rb = pltpu.roll(fusion, tbl - 1, axis=1)
    pb = pltpu.roll(pos, tbl - 1, axis=1)
    f_prev = (jnp.where(pa == pos - 1.0, ra, 0.0)
              + jnp.where(pb == pos - 1.0, rb, 0.0))                # fusion[:, l-1]
    f_next = (jnp.where(pa == pos + 1.0, ra, 0.0)
              + jnp.where(pb == pos + 1.0, rb, 0.0))                # fusion[:, l+1]

    #     ... and the 3-tap conv itself as ONE matmul on the K-stacked slab.
    stacked = jnp.concatenate([f_prev, fusion, f_next], axis=0).astype(bf16)
    y = jnp.dot(wc_ref[...], stacked, preferred_element_type=f32)   # (C_out, TB*L)

    # (6) folded output-BN bias + ReLU, single lane-dense store.
    o_ref[...] = jnp.maximum(y + bout_ref[...], 0.0)


# ---------------------------------------------------------------------------
# wrapper: operand folding, batch-block choice, pallas_call
# ---------------------------------------------------------------------------
def _pick_tb(batch, length, lane_target=256, max_lanes=2048):
    """Batch-block size: pack TB batch elements along lanes so the kernel's last
    dim is lane-dense (multiple of 128, ideally >= 256 for the 256-wide v6e/v7x
    MXU) while keeping >= 2 parallel grid steps when possible (feeds both v7x
    TensorCores)."""
    divisors = [d for d in range(1, batch + 1) if batch % d == 0]
    good = [d for d in divisors if (d * length) % 128 == 0 and d * length <= max_lanes]
    if not good:
        return batch                       # tiny problem: whole batch in one step
    pref = [d for d in good if batch // d >= 2] or good
    wide = [d for d in pref if d * length >= lane_target]
    return min(wide) if wide else max(pref)


def prepare_operands(params, L, tb):
    """Fold BN scales into the conv weights, stack branches / conv taps, and
    build the batch-block-diagonal pool / upsample operators (bf16)."""
    c_out, _ = params["w1"].shape
    bf16 = jnp.bfloat16

    s1, b1 = _bn_fold(params["bn1"])
    s2, b2 = _bn_fold(params["bn2"])
    s3, b3 = _bn_fold(params["bn3"])
    so, bo = _bn_fold(params["bno"])

    w_stack = jnp.concatenate([params["w1"] * s1[:, None],
                               params["w2"] * s2[:, None],
                               params["w3"] * s3[:, None]], axis=0)   # (3*C_out, C_in)
    b_branch = jnp.concatenate([b1, b2, b3])[:, None]                 # (3*C_out, 1)

    pool7 = np.concatenate([adaptive_pool_matrix(L, p) for p in (1, 2, 4)], axis=1)
    up7 = np.concatenate([interp_matrix(p, L) for p in (1, 2, 4)], axis=0)
    eye = np.eye(tb, dtype=np.float32)
    pool_kron = np.kron(eye, pool7)                                   # (TB*L, TB*7)
    up_kron = np.kron(eye, up7)                                       # (TB*7, TB*L)

    wc = params["wc"] * so[:, None, None]                             # (C_out, C_out, 3)
    wc_flat = jnp.concatenate([wc[:, :, 0], wc[:, :, 1], wc[:, :, 2]], axis=1)

    return dict(
        w_stack=w_stack.astype(bf16),
        b_branch=b_branch.astype(jnp.float32),
        pool=jnp.asarray(pool_kron, dtype=bf16),
        up=jnp.asarray(up_kron, dtype=bf16),
        wc_flat=wc_flat.astype(bf16),
        b_out=bo[:, None].astype(jnp.float32),
    )


def sppm_forward(x, params, *, tb=None):
    B, c_in, L = x.shape
    c_out = params["w1"].shape[0]
    if tb is None:
        tb = _pick_tb(B, L)
    assert B % tb == 0, (B, tb)
    tbl = tb * L
    ops = prepare_operands(params, L, tb)

    # Lane-dense layout: batch packed along lanes -> x_wide[c, b*L + l] = x[b, c, l].
    x_wide = jnp.transpose(x, (1, 0, 2)).reshape(c_in, B * L).astype(jnp.bfloat16)

    const = lambda a: pl.BlockSpec(a.shape, lambda g: (0,) * a.ndim)
    # NOTE: the constant operands are grid-invariant; pipeline_mode=pl.Buffered(1)
    # would halve their VMEM footprint at larger sizes (left at the default here).

    kernel = functools.partial(sppm_kernel, c_out=c_out, seq_len=L)
    out_wide = pl.pallas_call(
        kernel,
        out_shape=jax.ShapeDtypeStruct((c_out, B * L), jnp.float32),
        grid_spec=pltpu.PrefetchScalarGridSpec(
            num_scalar_prefetch=0,
            grid=(B // tb,),
            in_specs=[
                pl.BlockSpec((c_in, tbl), lambda g: (0, g)),
                const(ops["w_stack"]),
                const(ops["pool"]),
                const(ops["up"]),
                const(ops["wc_flat"]),
                const(ops["b_branch"]),
                const(ops["b_out"]),
            ],
            out_specs=pl.BlockSpec((c_out, tbl), lambda g: (0, g)),
        ),
        compiler_params=pltpu.CompilerParams(
            dimension_semantics=("parallel",),     # batch blocks feed both v7x TCs
            vmem_limit_bytes=32 * 1024 * 1024,     # explicit budget, fits v7x 64 MiB
        ),
    )(x_wide, ops["w_stack"], ops["pool"], ops["up"],
      ops["wc_flat"], ops["b_branch"], ops["b_out"])

    return jnp.transpose(out_wide.reshape(c_out, B, L), (1, 0, 2))


# ---------------------------------------------------------------------------
# parameter construction (deterministic, synthetic) + pure-JAX f32 reference
# ---------------------------------------------------------------------------
def make_params(key, c_in, c_out):
    """Torch-like SPPM parameters (Conv1d weights + eval-mode BatchNorm stats)."""
    k1, k2, k3, k4 = jax.random.split(key, 4)

    def bn(i):
        idx = jnp.arange(c_out, dtype=jnp.float32)
        return dict(gamma=1.0 + 0.01 * (idx + i), beta=0.01 * (idx - i),
                    mean=0.02 * idx - 0.01 * i, var=1.0 + 0.03 * idx)

    return dict(
        w1=jax.random.normal(k1, (c_out, c_in), jnp.float32) * 0.1,
        w2=jax.random.normal(k2, (c_out, c_in), jnp.float32) * 0.1,
        w3=jax.random.normal(k3, (c_out, c_in), jnp.float32) * 0.1,
        wc=jax.random.normal(k4, (c_out, c_out, 3), jnp.float32) * 0.1,
        bn1=bn(0), bn2=bn(1), bn3=bn(2), bno=bn(3),
    )


def sppm_reference(x, params):
    """Pure-JAX f32 reference with the original per-branch structure."""
    _, _, L = x.shape

    def bn_relu(y, bn):
        s, b = _bn_fold(bn)
        return jnp.maximum(y * s[None, :, None] + b[None, :, None], 0.0)

    def branch(w, bn, p):
        pool_m = jnp.asarray(adaptive_pool_matrix(L, p))
        up_m = jnp.asarray(interp_matrix(p, L))
        pooled = jnp.einsum("bcl,lp->bcp", x, pool_m)
        y = bn_relu(jnp.einsum("oc,bcp->bop", w, pooled), bn)
        return jnp.einsum("bop,pl->bol", y, up_m)

    fusion = (branch(params["w1"], params["bn1"], 1)
              + branch(params["w2"], params["bn2"], 2)
              + branch(params["w3"], params["bn3"], 4))
    zero = jnp.zeros_like(fusion[:, :, :1])
    f_prev = jnp.concatenate([zero, fusion[:, :, :-1]], axis=2)
    f_next = jnp.concatenate([fusion[:, :, 1:], zero], axis=2)
    wc = params["wc"]
    y = (jnp.einsum("oc,bcl->bol", wc[:, :, 0], f_prev)
         + jnp.einsum("oc,bcl->bol", wc[:, :, 1], fusion)
         + jnp.einsum("oc,bcl->bol", wc[:, :, 2], f_next))
    return bn_relu(y, params["bno"])


if __name__ == "__main__":
    B, C_IN, C_OUT, L = 4, 16, 32, 64
    key = jax.random.PRNGKey(0)
    kx, kp = jax.random.split(key)
    x = jax.random.normal(kx, (B, C_IN, L), jnp.float32)
    params = make_params(kp, C_IN, C_OUT)

    out = jax.block_until_ready(sppm_forward(x, params))
    ref = jax.block_until_ready(sppm_reference(x, params))

    assert out.shape == (B, C_OUT, L), out.shape
    # bf16 matmul operands (f32 accumulation) in the kernel vs. an f32 reference.
    assert np.allclose(np.asarray(out), np.asarray(ref), atol=5e-2, rtol=5e-2), \
        float(np.max(np.abs(np.asarray(out) - np.asarray(ref))))
    print("KERNEL_OK")
</pallas_src>

<mosaic_0001>
module attributes {stable_mosaic.version = 11 : i64} {
  func.func @sppm_kernel(%arg0: i32, %arg1: memref<16x128xbf16, #tpu.memory_space<vmem>>, %arg2: memref<96x16xbf16, #tpu.memory_space<vmem>>, %arg3: memref<128x14xbf16, #tpu.memory_space<vmem>>, %arg4: memref<14x128xbf16, #tpu.memory_space<vmem>>, %arg5: memref<32x96xbf16, #tpu.memory_space<vmem>>, %arg6: memref<96x1xf32, #tpu.memory_space<vmem>>, %arg7: memref<32x1xf32, #tpu.memory_space<vmem>>, %arg8: memref<32x128xf32, #tpu.memory_space<vmem>>) attributes {dimension_semantics = [#tpu.dimension_semantics<parallel>], iteration_bounds = array<i64: 2>, scalar_prefetch = 0 : i64, scratch_operands = 0 : i64, tpu.core_type = #tpu.core_type<tc>, window_params = [{transform_indices = @transform_0, window_bounds = array<i64: 16, 128>}, {pipeline_mode = #tpu.pipeline_mode<synchronous>, transform_indices = @transform_1, window_bounds = array<i64: 96, 16>}, {pipeline_mode = #tpu.pipeline_mode<synchronous>, transform_indices = @transform_2, window_bounds = array<i64: 128, 14>}, {pipeline_mode = #tpu.pipeline_mode<synchronous>, transform_indices = @transform_3, window_bounds = array<i64: 14, 128>}, {pipeline_mode = #tpu.pipeline_mode<synchronous>, transform_indices = @transform_4, window_bounds = array<i64: 32, 96>}, {pipeline_mode = #tpu.pipeline_mode<synchronous>, transform_indices = @transform_5, window_bounds = array<i64: 96, 1>}, {pipeline_mode = #tpu.pipeline_mode<synchronous>, transform_indices = @transform_6, window_bounds = array<i64: 32, 1>}, {transform_indices = @transform_7, window_bounds = array<i64: 32, 128>}]} {
    %c0 = arith.constant 0 : index
    %c0_0 = arith.constant 0 : index
    %0 = vector.load %arg1[%c0, %c0_0] : memref<16x128xbf16, #tpu.memory_space<vmem>>, vector<16x128xbf16>
    %c0_1 = arith.constant 0 : index
    %c0_2 = arith.constant 0 : index
    %1 = vector.load %arg3[%c0_1, %c0_2] : memref<128x14xbf16, #tpu.memory_space<vmem>>, vector<128x14xbf16>
    %cst = arith.constant dense<0.000000e+00> : vector<16x14xf32>
    %2 = tpu.matmul %0, %1, %cst {dimension_numbers = #tpu.dot_dimension_numbers<[1], [0], [0], [1], [0, 0, 1, 1], [], []>} : vector<16x128xbf16>, vector<128x14xbf16>, vector<16x14xf32> -> vector<16x14xf32>
    %c0_3 = arith.constant 0 : index
    %c0_4 = arith.constant 0 : index
    %3 = vector.load %arg2[%c0_3, %c0_4] : memref<96x16xbf16, #tpu.memory_space<vmem>>, vector<96x16xbf16>
    %4 = arith.truncf %2 : vector<16x14xf32> to vector<16x14xbf16>
    %cst_5 = arith.constant dense<0.000000e+00> : vector<96x14xf32>
    %5 = tpu.matmul %3, %4, %cst_5 {dimension_numbers = #tpu.dot_dimension_numbers<[1], [0], [0], [1], [0, 0, 1, 1], [], []>} : vector<96x16xbf16>, vector<16x14xbf16>, vector<96x14xf32> -> vector<96x14xf32>
    %c0_6 = arith.constant 0 : index
    %c0_7 = arith.constant 0 : index
    %6 = vector.load %arg6[%c0_6, %c0_7] : memref<96x1xf32, #tpu.memory_space<vmem>>, vector<96x1xf32>
    %7 = vector.broadcast %6 : vector<96x1xf32> to vector<96x14xf32>
    %8 = arith.addf %5, %7 : vector<96x14xf32>
    %cst_8 = arith.constant 0.000000e+00 : f32
    %9 = vector.broadcast %cst_8 : f32 to vector<96x14xf32>
    %10 = arith.maximumf %8, %9 : vector<96x14xf32>
    %11 = tpu.iota {dimensions = array<i32: 1>} : vector<32x14xi32>
    %c7_i32 = arith.constant 7 : i32
    %c0_i32 = arith.constant 0 : i32
    %12 = arith.cmpi eq, %c7_i32, %c0_i32 : i32
    %c1_i32 = arith.constant 1 : i32
    %13 = arith.select %12, %c1_i32, %c7_i32 : i32
    %14 = vector.broadcast %13 : i32 to vector<32x14xi32>
    %15 = arith.remsi %11, %14 : vector<32x14xi32>
    %c0_i32_9 = arith.constant 0 : i32
    %16 = vector.broadcast %c0_i32_9 : i32 to vector<32x14xi32>
    %17 = arith.cmpi ne, %15, %16 : vector<32x14xi32>
    %c0_i32_10 = arith.constant 0 : i32
    %18 = vector.broadcast %c0_i32_10 : i32 to vector<32x14xi32>
    %19 = arith.cmpi slt, %15, %18 : vector<32x14xi32>
    %c0_i32_11 = arith.constant 0 : i32
    %20 = arith.cmpi slt, %13, %c0_i32_11 : i32
    %21 = vector.broadcast %20 : i1 to vector<32x14xi1>
    %22 = vector.broadcast %21 : vector<32x14xi1> to vector<32x14xi1>
    %23 = arith.xori %19, %22 : vector<32x14xi1>
    %24 = arith.andi %23, %17 : vector<32x14xi1>
    %25 = vector.broadcast %13 : i32 to vector<32x14xi32>
    %26 = arith.addi %15, %25 : vector<32x14xi32>
    %27 = arith.select %24, %26, %15 : vector<32x14xi1>, vector<32x14xi32>
    %c0_i32_12 = arith.constant 0 : i32
    %28 = vector.broadcast %c0_i32_12 : i32 to vector<32x14xi32>
    %29 = arith.cmpi eq, %27, %28 : vector<32x14xi32>
    %30 = vector.extract_strided_slice %10 {offsets = [0, 0], sizes = [32, 14], strides = [1, 1]} : vector<96x14xf32> to vector<32x14xf32>
    %cst_13 = arith.constant 0.000000e+00 : f32
    %31 = vector.broadcast %cst_13 : f32 to vector<32x14xf32>
    %32 = arith.select %29, %30, %31 : vector<32x14xi1>, vector<32x14xf32>
    %c1_i32_14 = arith.constant 1 : i32
    %33 = vector.broadcast %c1_i32_14 : i32 to vector<32x14xi32>
    %34 = arith.cmpi sge, %27, %33 : vector<32x14xi32>
    %c2_i32 = arith.constant 2 : i32
    %35 = vector.broadcast %c2_i32 : i32 to vector<32x14xi32>
    %36 = arith.cmpi sle, %27, %35 : vector<32x14xi32>
    %37 = arith.andi %34, %36 : vector<32x14xi1>
    %38 = vector.extract_strided_slice %10 {offsets = [32, 0], sizes = [32, 14], strides = [1, 1]} : vector<96x14xf32> to vector<32x14xf32>
    %cst_15 = arith.constant 0.000000e+00 : f32
    %39 = vector.broadcast %cst_15 : f32 to vector<32x14xf32>
    %40 = arith.select %37, %38, %39 : vector<32x14xi1>, vector<32x14xf32>
    %41 = arith.addf %32, %40 : vector<32x14xf32>
    %c3_i32 = arith.constant 3 : i32
    %42 = vector.broadcast %c3_i32 : i32 to vector<32x14xi32>
    %43 = arith.cmpi sge, %27, %42 : vector<32x14xi32>
    %44 = vector.extract_strided_slice %10 {offsets = [64, 0], sizes = [32, 14], strides = [1, 1]} : vector<96x14xf32> to vector<32x14xf32>
    %cst_16 = arith.constant 0.000000e+00 : f32
    %45 = vector.broadcast %cst_16 : f32 to vector<32x14xf32>
    %46 = arith.select %43, %44, %45 : vector<32x14xi1>, vector<32x14xf32>
    %47 = arith.addf %41, %46 : vector<32x14xf32>
    %48 = arith.truncf %47 : vector<32x14xf32> to vector<32x14xbf16>
    %c0_17 = arith.constant 0 : index
    %c0_18 = arith.constant 0 : index
    %49 = vector.load %arg4[%c0_17, %c0_18] : memref<14x128xbf16, #tpu.memory_space<vmem>>, vector<14x128xbf16>
    %cst_19 = arith.constant dense<0.000000e+00> : vector<32x128xf32>
    %50 = tpu.matmul %48, %49, %cst_19 {dimension_numbers = #tpu.dot_dimension_numbers<[1], [0], [0], [1], [0, 0, 1, 1], [], []>} : vector<32x14xbf16>, vector<14x128xbf16>, vector<32x128xf32> -> vector<32x128xf32>
    %51 = tpu.iota {dimensions = array<i32: 1>} : vector<32x128xi32>
    %c64_i32 = arith.constant 64 : i32
    %c0_i32_20 = arith.constant 0 : i32
    %52 = arith.cmpi eq, %c64_i32, %c0_i32_20 : i32
    %c1_i32_21 = arith.constant 1 : i32
    %53 = arith.select %52, %c1_i32_21, %c64_i32 : i32
    %54 = vector.broadcast %53 : i32 to vector<32x128xi32>
    %55 = arith.remsi %51, %54 : vector<32x128xi32>
    %c0_i32_22 = arith.constant 0 : i32
    %56 = vector.broadcast %c0_i32_22 : i32 to vector<32x128xi32>
    %57 = arith.cmpi ne, %55, %56 : vector<32x128xi32>
    %c0_i32_23 = arith.constant 0 : i32
    %58 = vector.broadcast %c0_i32_23 : i32 to vector<32x128xi32>
    %59 = arith.cmpi slt, %55, %58 : vector<32x128xi32>
    %c0_i32_24 = arith.constant 0 : i32
    %60 = arith.cmpi slt, %53, %c0_i32_24 : i32
    %61 = vector.broadcast %60 : i1 to vector<32x128xi1>
    %62 = vector.broadcast %61 : vector<32x128xi1> to vector<32x128xi1>
    %63 = arith.xori %59, %62 : vector<32x128xi1>
    %64 = arith.andi %63, %57 : vector<32x128xi1>
    %65 = vector.broadcast %53 : i32 to vector<32x128xi32>
    %66 = arith.addi %55, %65 : vector<32x128xi32>
    %67 = arith.select %64, %66, %55 : vector<32x128xi1>, vector<32x128xi32>
    %68 = arith.sitofp %67 : vector<32x128xi32> to vector<32x128xf32>
    %c1_i32_25 = arith.constant 1 : i32
    %69 = tpu.dynamic_rotate %50 by %c1_i32_25 dim 1 : vector<32x128xf32>, i32 -> vector<32x128xf32>
    %c1_i32_26 = arith.constant 1 : i32
    %70 = tpu.dynamic_rotate %68 by %c1_i32_26 dim 1 : vector<32x128xf32>, i32 -> vector<32x128xf32>
    %c127_i32 = arith.constant 127 : i32
    %71 = tpu.dynamic_rotate %50 by %c127_i32 dim 1 : vector<32x128xf32>, i32 -> vector<32x128xf32>
    %c127_i32_27 = arith.constant 127 : i32
    %72 = tpu.dynamic_rotate %68 by %c127_i32_27 dim 1 : vector<32x128xf32>, i32 -> vector<32x128xf32>
    %cst_28 = arith.constant 1.000000e+00 : f32
    %73 = vector.broadcast %cst_28 : f32 to vector<32x128xf32>
    %74 = arith.subf %68, %73 : vector<32x128xf32>
    %75 = arith.cmpf oeq, %70, %74 : vector<32x128xf32>
    %cst_29 = arith.constant 0.000000e+00 : f32
    %76 = vector.broadcast %cst_29 : f32 to vector<32x128xf32>
    %77 = arith.select %75, %69, %76 : vector<32x128xi1>, vector<32x128xf32>
    %cst_30 = arith.constant 1.000000e+00 : f32
    %78 = vector.broadcast %cst_30 : f32 to vector<32x128xf32>
    %79 = arith.subf %68, %78 : vector<32x128xf32>
    %80 = arith.cmpf oeq, %72, %79 : vector<32x128xf32>
    %cst_31 = arith.constant 0.000000e+00 : f32
    %81 = vector.broadcast %cst_31 : f32 to vector<32x128xf32>
    %82 = arith.select %80, %71, %81 : vector<32x128xi1>, vector<32x128xf32>
    %83 = arith.addf %77, %82 : vector<32x128xf32>
    %cst_32 = arith.constant 1.000000e+00 : f32
    %84 = vector.broadcast %cst_32 : f32 to vector<32x128xf32>
    %85 = arith.addf %68, %84 : vector<32x128xf32>
    %86 = arith.cmpf oeq, %70, %85 : vector<32x128xf32>
    %cst_33 = arith.constant 0.000000e+00 : f32
    %87 = vector.broadcast %cst_33 : f32 to vector<32x128xf32>
    %88 = arith.select %86, %69, %87 : vector<32x128xi1>, vector<32x128xf32>
    %cst_34 = arith.constant 1.000000e+00 : f32
    %89 = vector.broadcast %cst_34 : f32 to vector<32x128xf32>
    %90 = arith.addf %68, %89 : vector<32x128xf32>
    %91 = arith.cmpf oeq, %72, %90 : vector<32x128xf32>
    %cst_35 = arith.constant 0.000000e+00 : f32
    %92 = vector.broadcast %cst_35 : f32 to vector<32x128xf32>
    %93 = arith.select %91, %71, %92 : vector<32x128xi1>, vector<32x128xf32>
    %94 = arith.addf %88, %93 : vector<32x128xf32>
    %95 = tpu.concatenate %83, %50, %94 in 0 : vector<32x128xf32>, vector<32x128xf32>, vector<32x128xf32> -> vector<96x128xf32>
    %96 = arith.truncf %95 : vector<96x128xf32> to vector<96x128xbf16>
    %c0_36 = arith.constant 0 : index
    %c0_37 = arith.constant 0 : index
    %97 = vector.load %arg5[%c0_36, %c0_37] : memref<32x96xbf16, #tpu.memory_space<vmem>>, vector<32x96xbf16>
    %cst_38 = arith.constant dense<0.000000e+00> : vector<32x128xf32>
    %98 = tpu.matmul %97, %96, %cst_38 {dimension_numbers = #tpu.dot_dimension_numbers<[1], [0], [0], [1], [0, 0, 1, 1], [], []>} : vector<32x96xbf16>, vector<96x128xbf16>, vector<32x128xf32> -> vector<32x128xf32>
    %c0_39 = arith.constant 0 : index
    %c0_40 = arith.constant 0 : index
    %99 = vector.load %arg7[%c0_39, %c0_40] : memref<32x1xf32, #tpu.memory_space<vmem>>, vector<32x1xf32>
    %100 = vector.broadcast %99 : vector<32x1xf32> to vector<32x128xf32>
    %101 = arith.addf %98, %100 : vector<32x128xf32>
    %cst_41 = arith.constant 0.000000e+00 : f32
    %102 = vector.broadcast %cst_41 : f32 to vector<32x128xf32>
    %103 = arith.maximumf %101, %102 : vector<32x128xf32>
    %c0_42 = arith.constant 0 : index
    %c0_43 = arith.constant 0 : index
    %104 = vector.load %arg8[%c0_42, %c0_43] : memref<32x128xf32, #tpu.memory_space<vmem>>, vector<32x128xf32>
    tpu.vector_store %arg8[%c0_42, %c0_43], %103 {strides = array<i32>} : memref<32x128xf32, #tpu.memory_space<vmem>>, vector<32x128xf32>,
    return
  }
  func.func @transform_0(%arg0: i32) -> (i32, i32) {
    %c0_i32 = arith.constant 0 : i32
    %c0_i32_0 = arith.constant 0 : i32
    return %c0_i32, %arg0 : i32, i32
  }
  func.func @transform_1(%arg0: i32) -> (i32, i32) {
    %c0_i32 = arith.constant 0 : i32
    %c0_i32_0 = arith.constant 0 : i32
    %c0_i32_1 = arith.constant 0 : i32
    return %c0_i32, %c0_i32_0 : i32, i32
  }
  func.func @transform_2(%arg0: i32) -> (i32, i32) {
    %c0_i32 = arith.constant 0 : i32
    %c0_i32_0 = arith.constant 0 : i32
    %c0_i32_1 = arith.constant 0 : i32
    return %c0_i32, %c0_i32_0 : i32, i32
  }
  func.func @transform_3(%arg0: i32) -> (i32, i32) {
    %c0_i32 = arith.constant 0 : i32
    %c0_i32_0 = arith.constant 0 : i32
    %c0_i32_1 = arith.constant 0 : i32
    return %c0_i32, %c0_i32_0 : i32, i32
  }
  func.func @transform_4(%arg0: i32) -> (i32, i32) {
    %c0_i32 = arith.constant 0 : i32
    %c0_i32_0 = arith.constant 0 : i32
    %c0_i32_1 = arith.constant 0 : i32
    return %c0_i32, %c0_i32_0 : i32, i32
  }
  func.func @transform_5(%arg0: i32) -> (i32, i32) {
    %c0_i32 = arith.constant 0 : i32
    %c0_i32_0 = arith.constant 0 : i32
    %c0_i32_1 = arith.constant 0 : i32
    return %c0_i32, %c0_i32_0 : i32, i32
  }
  func.func @transform_6(%arg0: i32) -> (i32, i32) {
    %c0_i32 = arith.constant 0 : i32
    %c0_i32_0 = arith.constant 0 : i32
    %c0_i32_1 = arith.constant 0 : i32
    return %c0_i32, %c0_i32_0 : i32, i32
  }
  func.func @transform_7(%arg0: i32) -> (i32, i32) {
    %c0_i32 = arith.constant 0 : i32
    %c0_i32_0 = arith.constant 0 : i32
    return %c0_i32, %arg0 : i32, i32
  }
}

</mosaic_0001>

<bundles_post_ra>
// kernel: tpu_custom_call.1
= control target key start
LH: loop header
LB: loop body
LE: loop exit
PB: predicated region body
PF: predicated region fallthrough
CT: control target
= control target key end

     0   :  { %12 = vsyncpa [#allocation4], 0  ;;  %s1591_s0 = inlined_call_operand.vmem [shape: bf16[16,256], index: 0, kind: input, shape index: {}]   ;;  %s1592_s1 = inlined_call_operand.vmem [shape: bf16[96,16], index: 1, kind: input, shape index: {}]   ;;  %s1593_s2 = inlined_call_operand.vmem [shape: bf16[128,14], index: 2, kind: input, shape index: {}]   ;;  %s1594_s3 = inlined_call_operand.vmem [shape: bf16[14,128], index: 3, kind: input, shape index: {}]   ;;  %s1595_s4 = inlined_call_operand.vmem [shape: bf16[32,96], index: 4, kind: input, shape index: {}]   ;;  %s1596_s5 = inlined_call_operand.vmem [shape: f32[96,1], index: 5, kind: input, shape index: {}]   ;;  %s1597_s6 = inlined_call_operand.vmem [shape: f32[32,1], index: 6, kind: input, shape index: {}]   ;;  %s1598_s7 = inlined_call_operand.hbm [shape: f32[32,256], index: 7, kind: output, shape index: {}]  }
   0x1   :  { %14 = vsyncpa [#allocation4 + $0x1], 0  ;;  %s1337_s24 = smov 0   ;;  %s1339_s25 = smov 0  }
   0x2   :  { %s1341_s26 = smov 0   ;;  %s1343_s27 = smov 0  }
   0x3 LB: > { %s1031_s28 = sadd.s32 4294967295, %s1286_s27   ;;  %s1032_s29 = sadd.s32 4294967294, %s1286_s27   ;;  %s1286_s27 = sphi %s1343_s27, %s1604_s27   ;;  %s1282_s26 = sphi %s1341_s26, %s1603_s26   ;;  %s1278_s25 = sphi %s1339_s25, %s1602_s25   ;;  %s1274_s24 = sphi %s1337_s24, %s1601_s24  }
   0x4   : > { %s1360_s30 = sadd.s32 1, %s1286_s27   ;;  %s27_s8 = sadd.s32 1, %s1282_s26 }
   0x5   : > { %s24_s9 = ssub.s32 %s1286_s27, %s1360_s30  ;;  %p34_p0 = scmp.ne.s32.totalorder %s1282_s26, %s1278_s25 }
   0x6   : > { %p25_p1 = scmp.eq.s32.totalorder %s24_s9, 0  ;;  %p35_p2 = scmp.eq.s32.totalorder %s1286_s27, 0 }
   0x7   : > { %p190_p3 = scmp.eq.s32.totalorder %s1031_s28, 1  ;;  %p195_p4 = scmp.ne.s32.totalorder %s1278_s25, %s1274_s24 }
   0x8   : > { %s1373_s10 = scalar_select %p25_p1, %s1282_s26, %s27_s8  }
   0x9   : > { %p36_p5 = por %p35_p2, %p34_p0  ;;  %p1375_p6 = por %p190_p3, %p34_p0 }
   0xa   : > { %p196_p7 = scmp.eq.s32.totalorder %s1032_s29, 1  ;;  %p1034_p9 = scmp.ge.s32.totalorder %s1286_s27, 2 }
   0xc   : > { %p1379_p8 = por %p196_p7, %p195_p4  ;;  %230 = sbr.rel (%p1034_p9) target bundleno = 22 (0x16), region = 40 }
  0x11   : > { %233 = sbr.rel (!%p36_p5) target bundleno = 22 (0x16), region = 44  ;;  %s235_s13 = sand.u32 (%p36_p5), 1, %s1282_s26  }
  0x12   : > { %s1036_s14 = sshll.u32 (%p36_p5), %s1286_s27, 2  ;;  %s1035_s15 = sshll.u32 (%p36_p5), %s235_s13, 3 }
  0x13   : > { %s239_s18 = scalar_lea.vmem (%p36_p5), %s1591_s0, %s1036_s14  ;;  %s237_s19 = scalar_lea.vmem (%p36_p5), [#allocation2], %s1035_s15 }
  0x14   : > { %v256_v0 = vld [vmem:[%s239_s18] sm:$0xf] (%p36_p5)  ;;  %v258_v1 = vld [vmem:[%s239_s18 + $0x8] sm:$0xf] (%p36_p5) }
  0x15   : > { %257 = vst [vmem:[%s237_s19] sm:$0xf] (%p36_p5), %v256_v0  ;;  %259 = vst [vmem:[%s237_s19 + $0x4] sm:$0xf] (%p36_p5), %v258_v1 }
  0x16 PF: > { %p1037_p10 = scmp.ge.s32.totalorder %s1286_s27, 1  ;;  %p286_p11 = scmp.lt.s32.totalorder %s1286_s27, 3 }
  0x18   : > { %p287_p12 = pnand %p1037_p10, %p286_p11 }
  0x19   : > { %s1400_s29 = sand.u32 (!%p287_p12), 1, %s1278_s25   ;;  %s1292_s9 = smov (!%p287_p12), 127  }
  0x1a   : > { %290 = sbr.rel (%p287_p12) target bundleno = 1059 (0x423), region = 85  ;;  %s1038_s8 = sshll.u32 (!%p287_p12), %s1400_s29, 3 }
  0x1b   : > { %s295_s16 = scalar_lea.vmem (!%p287_p12), [#allocation2], %s1038_s8  ;;  %s1291_s8 = smov (!%p287_p12), 1  }
  0x1c   : > { %s1070_s15 = sshll.u32 (!%p287_p12), %s1031_s28, 7  ;;  %s952_s19 = scalar_lea.sflag (!%p287_p12), [#allocation4], %s1400_s29 }
  0x1d   : > { %s1293_s28 = smov (!%p287_p12), [#allocation3]  }
  0x1e   : > { %s1230_s21 = sshll.u32 (!%p287_p12), %s1293_s28, 4  ;;  %s1231_s21 = int_to_ptr.vmem [resolvable:$false] %s1230_s21 }
  0x1f   : > { %v1208_v2 = vld [vmem:[%s1593_s2 + $0x38] sm:$0xff]   ;;  %v1288_v3 = vmov 0.0   ;;  %v1209_v4 = vld [vmem:[%s1593_s2 + $0x30] sm:$0xff]   ;;  %vm1289_vm0 = vmmov 0   ;;  %v1210_v5 = vld [vmem:[%s1593_s2 + $0x28] sm:$0xff]   ;;  %vm553_vm1 = vcmask 130048   ;;  %v665_v36 = vlaneseq }
  0x20   : > { %1100 = vmatprep.subr.bf16.mxu0 %v1288_v3  ;;  %1116 = vmatprep.mubr.msk.bf16.mxu0 %vm1289_vm0, %v1288_v3  ;;  %v1211_v6 = vld [vmem:[%s1593_s2 + $0x20] sm:$0xff]   ;;  %v1212_v7 = vld [vmem:[%s1593_s2 + $0x18] sm:$0xff]   ;;  %v1213_v8 = vld [vmem:[%s1593_s2 + $0x10] sm:$0xff]   ;;  %v1290_v15 = vmov 0   ;;  %vm727_vm2 = vcmask 1046528   ;;  %vm720_vm12 = vcmask 113664  }
  0x21   : > { %1101 = vmatpush3.bf16.msra.mxu0 %v1208_v2  ;;  %v1214_v9 = vld [vmem:[%s1593_s2 + $0x8] sm:$0xff]   ;;  %v1215_v10 = vld [vmem:[%s1593_s2] sm:$0xff]   ;;  %1207 = vset.pattern.permute.xlu1 %v1290_v15  ;;  %v454_v18 = vld [vmem:[%s1596_s5 + $0x18] sm:$0xff]  ;;  %v666_v39 = vand.u32 127, %v665_v36  ;;  %vm887_vm13 = vcmask 785408   ;;  %s1232_s22 = scalar_lea.vmem %s1231_s21, 1024 }
  0x22   : > { %1102 = vmatprep.subr.bf16.mxu0 %v1288_v3  ;;  %v1216_v11 = vld [vmem:[%s295_s16] sm:$0xff]   ;;  %1206 = vset.pattern.permute.xlu0 %v1290_v15  ;;  %v453_v19 = vld [vmem:[%s1596_s5 + $0x10] sm:$0xff]  ;;  %v458_v20 = vld [vmem:[%s1596_s5 + $0x38] sm:$0xff]  ;;  %s1548_s16 = scalar_lea.hbm %s1598_s7, %s1070_s15 }
  0x23   : > { %v1217_v12 = vld [vmem:[%s1592_s1] sm:$0xff]   ;;  %v456_v16 = vld [vmem:[%s1596_s5 + $0x28] sm:$0xff]  ;;  %v457_v21 = vld [vmem:[%s1596_s5 + $0x30] sm:$0xff]  ;;  %v784_v40 = vand.u32 63, %v666_v39  ;;  %v1488_v42 = vmul.u32.u64.low 2454267026, %v666_v39  ;;  %v1489_v43 = vmul.u32.u64.high 2454267026, %v666_v39, %v1488_v42 }
  0x24   : > { %1122 = vmatprep.mubr.msk.bf16.mxu1 %vm553_vm1, %v1217_v12  ;;  %v455_v13 = vld [vmem:[%s1596_s5 + $0x20] sm:$0xff]  ;;  %v452_v17 = vld [vmem:[%s1596_s5 + $0x8] sm:$0xff]  ;;  %v462_v24 = vld [vmem:[%s1596_s5 + $0x58] sm:$0xff] }
  0x25   : > { %1103 = vmatpush3.bf16.msra.mxu0 %v1209_v4  ;;  %v451_v14 = vld [vmem:[%s1596_s5] sm:$0xff]  ;;  %485 = vperm.xlu1 %1207, %v455_v13   ;;  %v460_v22 = vld [vmem:[%s1596_s5 + $0x48] sm:$0xff]  ;;  %v461_v25 = vld [vmem:[%s1596_s5 + $0x50] sm:$0xff]  ;;  %v1484_v41 = vcvt.s32.f32 %v784_v40  ;;  %vm673_vm3 = vc.u32 %v1488_v42, 2454267026 }
  0x26   : > { %1104 = vmatprep.subr.bf16.mxu0 %v1288_v3  ;;  %465 = vperm.xlu0 %1206, %v451_v14   ;;  %v459_v23 = vld [vmem:[%s1596_s5 + $0x40] sm:$0xff]  ;;  %v1218_v31 = vld [vmem:[%s1592_s1 + $0x8] sm:$0xff]   ;;  %v1219_v32 = vld [vmem:[%s1592_s1 + $0x10] sm:$0xff]   ;;  %v674_v45 = vsel %vm673_vm3, 1, %v1290_v15 }
  0x27   : > { %v1220_v33 = vld [vmem:[%s1592_s1 + $0x18] sm:$0xff]   ;;  %v1221_v34 = vld [vmem:[%s1592_s1 + $0x20] sm:$0xff]   ;;  %v1222_v35 = vld [vmem:[%s1592_s1 + $0x28] sm:$0xff]   ;;  %v675_v47 = vadd.s32 %v1489_v43, %v674_v45 }
  0x28   : > { %v1223_v37 = vld [vmem:[%s1594_s3] sm:$0x7f]  }
  0x29   : > { %1105 = vmatpush3.bf16.msra.mxu0 %v1210_v5  ;;  %490 = vperm.xlu1 %1207, %v456_v16   ;;  %v729_v38 = vsel %vm727_vm2, %v1223_v37, 0  ;;  %v676_v50 = vshrl.u32 %v675_v47, 2 }
  0x2a   : > { %1106 = vmatprep.subr.bf16.mxu0 %v1288_v3  ;;  %470 = vperm.xlu0 %1206, %v452_v17  }
  0x2b   : > { %v677_v53 = vmul.u32 7, %v676_v50 }
  0x2d   : > { %1107 = vmatpush3.bf16.msra.mxu0 %v1211_v6  ;;  %480 = vperm.xlu1 %1207, %v454_v18   ;;  %v678_v57 = vsub.s32 %v666_v39, %v677_v53 }
  0x2e   : > { %1108 = vmatprep.subr.bf16.mxu0 %v1288_v3  ;;  %475 = vperm.xlu0 %1206, %v453_v19  }
  0x2f   : > { %vm681_vm4 = vcmp.ne.s32.totalorder %v678_v57, 0  ;;  %vm682_vm5 = vcmp.lt.s32.totalorder %v678_v57, 0  ;;  %v684_v0 = vadd.s32 7, %v678_v57 }
  0x30   : > { %vm683_vm6 = vmand %vm682_vm5, %vm681_vm4 }
  0x31   : > { %1109 = vmatpush3.bf16.msra.mxu0 %v1212_v7  ;;  %500 = vperm.xlu1 %1207, %v458_v20   ;;  %v685_v5 = vsel %vm683_vm6, %v684_v0, %v678_v57  ;;  %v853_v0 = vld [vmem:[%s1597_s6] sm:$0xff] }
  0x32   : > { %1110 = vmatprep.subr.bf16.mxu0 %v1288_v3  ;;  %495 = vperm.xlu0 %1206, %v457_v21   ;;  %vm691_vm7 = vcmp.ge.s32.totalorder %v685_v5, 1  ;;  %vm692_vm8 = vcmp.le.s32.totalorder %v685_v5, 2  ;;  %vm686_vm9 = vcmp.eq.s32.totalorder %v685_v5, 0  ;;  %vm702_vm11 = vcmp.ge.s32.totalorder %v685_v5, 3 }
  0x33   : > { %vm693_vm10 = vmand %vm691_vm7, %vm692_vm8 }
  0x35   : > { %1111 = vmatpush3.bf16.msra.mxu0 %v1213_v8  ;;  %510 = vperm.xlu1 %1207, %v460_v22  }
  0x36   : > { %1112 = vmatprep.subr.bf16.mxu0 %v1288_v3  ;;  %505 = vperm.xlu0 %1206, %v459_v23  }
  0x39   : > { %1113 = vmatpush3.bf16.msra.mxu0 %v1214_v9  ;;  %520 = vperm.xlu1 %1207, %v462_v24  }
  0x3a   : > { %1114 = vmatprep.subr.bf16.mxu0 %v1288_v3  ;;  %515 = vperm.xlu0 %1206, %v461_v25  }
  0x3d   : > { %1115 = vmatpush3.bf16.msra.mxu0 %v1215_v10  ;;  %811 = vrot.lane.b32.xlu1 %v1484_v41, %s1292_s9 }
  0x3e   : > { %1156 = vmatprep.subr.msk.bf16.mxu0 %vm727_vm2, %v1223_v37  ;;  %801 = vrot.lane.b32.xlu0 %v1484_v41, %s1291_s8 }
  0x40   : > { %1117 = vmatmul.mubr.bf16.vlgmr.msra.gmra.mxu0 %v1216_v11 }
  0x41   : > { %1135 = vmatpush3.bf16.msra.mxu0 %v729_v38 }
  0xa0   : > { %v486_v46 = vpop.permute.xlu1 %485 }
  0xa1   : > { %v466_v44 = vpop.permute.xlu0 %465 }
  0xa4   : > { %v491_v49 = vpop.permute.xlu1 %490 }
  0xa5   : > { %v471_v48 = vpop.permute.xlu0 %470 }
  0xa8   : > { %v481_v54 = vpop.permute.xlu1 %480 }
  0xa9   : > { %v476_v51 = vpop.permute.xlu0 %475 }
  0xac   : > { %v501_v60 = vpop.permute.xlu1 %500 }
  0xad   : > { %v496_v58 = vpop.permute.xlu0 %495 }
  0xb0   : > { %v511_v2 = vpop.permute.xlu1 %510 }
  0xb1   : > { %v506_v63 = vpop.permute.xlu0 %505 }
  0xb4   : > { %v521_v22 = vpop.permute.xlu1 %520 }
  0xb5   : > { %v516_v13 = vpop.permute.xlu0 %515 }
  0xb9   : > { %v802_v5 = vpop.permute.xlu0 %801 }
 0x100   : > { %v431_v26 = vpop.f32.mrf.mxu0 }
 0x102   : > { %v1118_v27 = vpop.f32.mrf.mxu0 }
 0x104   : > { %v434_v28 = vpop.f32.mrf.mxu0 }
 0x105   : > { %v450_v29 = vpack.c.bf16 %v434_v28, %v431_v26 }
 0x106   : > { %v1119_v30 = vpop.f32.mrf.mxu0 }
 0x107   : > { %1120 = vmatprep.subr.bf16.mxu1 %v450_v29 }
 0x108   : > { %1121 = vmatpush3.bf16.msra.mxu1 %v450_v29 }
 0x10b   : > { %1123 = vmatmul.mubr.msk.bf16.vlgmr.msra.gmra.mxu1 %vm553_vm1, %v1218_v31 }
 0x10c   : > { %1126 = vmatprep.mubr.msk.bf16.mxu1 %vm553_vm1, %v1219_v32 }
 0x113   : > { %1127 = vmatmul.mubr.msk.bf16.gmra.mxu1 %vm553_vm1, %v1220_v33 }
 0x114   : > { %1130 = vmatprep.mubr.msk.bf16.mxu1 %vm553_vm1, %v1221_v34 }
 0x11b   : > { %1131 = vmatmul.mubr.msk.bf16.gmra.mxu1 %vm553_vm1, %v1222_v35 }
 0x1cb   : > { %v1124_v52 = vpop.f32.mrf.mxu1 }
 0x1cc   : > { %v615_v14 = vadd.f32 %v1124_v52, %v476_v51 }
 0x1cd   : > { %v606_v55 = vpop.f32.mrf.mxu1 }
 0x1ce   : > { %v607_v8 = vadd.f32 %v606_v55, %v466_v44  ;;  %v655_v29 = vmax.f32 %v615_v14, 0.0 }
 0x1cf   : > { %v1125_v56 = vpop.f32.mrf.mxu1 }
 0x1d0   : > { %v618_v9 = vadd.f32 %v1125_v56, %v481_v54  ;;  %v653_v21 = vmax.f32 %v607_v8, 0.0  ;;  %v828_v8 = vadd.f32 1.0, %v1484_v41 }
 0x1d1   : > { %v609_v59 = vpop.f32.mrf.mxu1 }
 0x1d2   : > { %v610_v10 = vadd.f32 %v609_v59, %v471_v48  ;;  %v656_v23 = vmax.f32 %v618_v9, 0.0  ;;  %v687_v37 = vsel %vm686_vm9, %v653_v21, 0.0  ;;  %vm829_vm14 = vcmp.eq.f32.partialorder %v802_v5, %v828_v8 }
 0x1d3   : > { %v1128_v61 = vpop.f32.mrf.mxu1 }
 0x1d4   : > { %v631_v11 = vadd.f32 %v1128_v61, %v496_v58  ;;  %v654_v24 = vmax.f32 %v610_v10, 0.0  ;;  %v690_v38 = vsel %vm686_vm9, %v656_v23, 0.0 }
 0x1d5   : > { %v622_v62 = vpop.f32.mrf.mxu1 }
 0x1d6   : > { %v623_v6 = vadd.f32 %v622_v62, %v486_v46  ;;  %v659_v25 = vmax.f32 %v631_v11, 0.0  ;;  %v688_v39 = vsel %vm686_vm9, %v654_v24, 0.0  ;;  %v689_v46 = vsel %vm686_vm9, %v655_v29, 0.0 }
 0x1d7   : > { %v1129_v1 = vpop.f32.mrf.mxu1 }
 0x1d8   : > { %v634_v3 = vadd.f32 %v1129_v1, %v501_v60  ;;  %v657_v18 = vmax.f32 %v623_v6, 0.0  ;;  %v696_v40 = vsel %vm693_vm10, %v659_v25, 0.0  ;;  %v855_v1 = vld [vmem:[%s1597_s6 + $0x10] sm:$0xff]  ;;  %v812_v6 = vpop.permute.xlu1 %811 }
 0x1d9   : > { %v625_v4 = vpop.f32.mrf.mxu1  ;;  %v700_v50 = vadd.f32 %v696_v40, %v689_v46  ;;  %vm834_vm15 = vcmp.eq.f32.partialorder %v812_v6, %v828_v8 }
 0x1da   : > { %v626_v7 = vadd.f32 %v625_v4, %v491_v49  ;;  %v660_v15 = vmax.f32 %v634_v3, 0.0  ;;  %v694_v33 = vsel %vm693_vm10, %v657_v18, 0.0  ;;  %v856_v3 = vld [vmem:[%s1597_s6 + $0x18] sm:$0xff]  ;;  %v1224_v4 = vld [vmem:[%s1595_s4] sm:$0xff]  }
 0x1db   : > { %v1132_v12 = vpop.f32.mrf.mxu1  ;;  %v698_v47 = vadd.f32 %v694_v33, %v687_v37  ;;  %1152 = vmatprep.mubr.msk.bf16.mxu1 %vm887_vm13, %v1224_v4 }
 0x1dc   : > { %v647_v16 = vadd.f32 %v1132_v12, %v516_v13  ;;  %v658_v19 = vmax.f32 %v626_v7, 0.0  ;;  %v697_v30 = vsel %vm693_vm10, %v660_v15, 0.0 }
 0x1dd   : > { %v638_v17 = vpop.f32.mrf.mxu1  ;;  %v701_v42 = vadd.f32 %v697_v30, %v690_v38 }
 0x1de   : > { %v639_v20 = vadd.f32 %v638_v17, %v506_v63  ;;  %v663_v31 = vmax.f32 %v647_v16, 0.0  ;;  %v695_v34 = vsel %vm693_vm10, %v658_v19, 0.0 }
 0x1df   : > { %v1133_v26 = vpop.f32.mrf.mxu1  ;;  %v699_v48 = vadd.f32 %v695_v34, %v688_v39 }
 0x1e0   : > { %v661_v27 = vmax.f32 %v639_v20, 0.0  ;;  %v650_v28 = vadd.f32 %v1133_v26, %v521_v22  ;;  %v705_v49 = vsel %vm702_vm11, %v663_v31, 0.0 }
 0x1e1   : > { %v641_v32 = vpop.f32.mrf.mxu1  ;;  %v709_v55 = vadd.f32 %v705_v49, %v700_v50 }
 0x1e2   : > { %v664_v35 = vmax.f32 %v650_v28, 0.0  ;;  %v642_v36 = vadd.f32 %v641_v32, %v511_v2  ;;  %v703_v43 = vsel %vm702_vm11, %v661_v27, 0.0  ;;  %v854_v2 = vld [vmem:[%s1597_s6 + $0x8] sm:$0xff]  ;;  %v1064_v27 = vadd.f32 -1.0, %v1484_v41 }
 0x1e3   : > { %v707_v53 = vadd.f32 %v703_v43, %v698_v47 }
 0x1e4   : > { %v706_v44 = vsel %vm702_vm11, %v664_v35, 0.0  ;;  %v662_v45 = vmax.f32 %v642_v36, 0.0  ;;  %vm819_vm0 = vcmp.eq.f32.partialorder %v812_v6, %v1064_v27  ;;  %vm814_vm1 = vcmp.eq.f32.partialorder %v802_v5, %v1064_v27 }
 0x1e5   : > { %v710_v51 = vadd.f32 %v706_v44, %v701_v42 }
 0x1e6   : > { %v704_v52 = vsel %vm702_vm11, %v662_v45, 0.0  ;;  %v1225_v45 = vld [vmem:[%s1595_s4 + $0x8] sm:$0xff]  }
 0x1e7   : > { %v708_v54 = vadd.f32 %v704_v52, %v699_v48  ;;  %v712_v57 = vpack.c.bf16 %v710_v51, %v709_v55 }
 0x1e9   : > { %v711_v56 = vpack.c.bf16 %v708_v54, %v707_v53 }
 0x1eb   : > { %1136 = vmatprep.mubr.msk.bf16.mxu0 %vm720_vm12, %v711_v56 }
 0x1ec   : > { %1137 = vmatmul.mubr.msk.bf16.vlgmr.msra.gmra.mxu0 %vm720_vm12, %v712_v57 }
 0x2ac   : > { %v1138_v58 = vpop.f32.mrf.mxu0 }
 0x2ad   : > { %797 = vrot.lane.b32.xlu0 %v1138_v58, %s1291_s8 }
 0x2ae   : > { %v765_v59 = vpop.f32.mrf.mxu0 }
 0x2b0   : > { %v1139_v60 = vpop.f32.mrf.mxu0 }
 0x2b1   : > { %v846_v61 = vpack.c.bf16 %v1139_v60, %v1138_v58  ;;  %807 = vrot.lane.b32.xlu0 %v1138_v58, %s1292_s9  ;;  %799 = vrot.lane.b32.xlu1 %v1139_v60, %s1291_s8 }
 0x2b2   : > { %v768_v62 = vpop.f32.mrf.mxu0 }
 0x2b3   : > { %v1504_v63 = vpack.c.bf16 %v768_v62, %v765_v59 }
 0x2b5   : > { %793 = vrot.lane.b32.xlu0 %v765_v59, %s1291_s8  ;;  %809 = vrot.lane.b32.xlu1 %v1139_v60, %s1292_s9 }
 0x2b9   : > { %803 = vrot.lane.b32.xlu0 %v765_v59, %s1292_s9  ;;  %795 = vrot.lane.b32.xlu1 %v768_v62, %s1291_s8 }
 0x2bd   : > { %859 = vperm.xlu0 %1206, %v853_v0   ;;  %805 = vrot.lane.b32.xlu1 %v768_v62, %s1292_s9  ;;  %s1039_s9 = sshll.u32 %s1400_s29, 5 }
 0x2be   : > { %s323_s13 = scalar_lea.vmem [#allocation3], %s1039_s9 }
 0x2bf   : > { %s964_s14 = sshll.u32 %s323_s13, 4  ;;  %s1543_s14 = int_to_ptr.vmem [resolvable:$true] %s964_s14 }
 0x2c0   : > { %s1226_s20 = scalar_lea.vmem %s1543_s14, 512  ;;  %p1233_p2 = scmp.lt.s32.totalorder %s1543_s14, %s1231_s21 }
 0x2c1   : > { %869 = vperm.xlu0 %1206, %v855_v1   ;;  %864 = vperm.xlu1 %1207, %v854_v2   ;;  %p1227_p13 = scmp.ne.s32.totalorder %s1543_s14, %s1226_s20  ;;  %p1234_p3 = scmp.lt.s32.totalorder %s1232_s22, %s1226_s20 }
 0x2c3   : > { %p1228_p0 = pnand %p1227_p13, %p1375_p6  ;;  %p1235_p4 = por %p1234_p3, %p1233_p2 }
 0x2c5   : > { %874 = vperm.xlu1 %1207, %v856_v3   ;;  %p1229_p1 = pneg %p1228_p0 }
 0x2c7   : > { %p1236_p5 = pnand %p1235_p4, %p1229_p1 }
 0x31f   : > { %v798_v7 = vpop.permute.xlu0 %797 }
 0x320   : > { %v832_v14 = vsel %vm829_vm14, %v798_v7, 0.0  ;;  %v817_v35 = vsel %vm814_vm1, %v798_v7, 0.0 }
 0x323   : > { %v808_v9 = vpop.permute.xlu0 %807  ;;  %v800_v10 = vpop.permute.xlu1 %799 }
 0x324   : > { %v837_v11 = vsel %vm834_vm15, %v808_v9, 0.0  ;;  %v833_v15 = vsel %vm829_vm14, %v800_v10, 0.0  ;;  %v822_v32 = vsel %vm819_vm0, %v808_v9, 0.0  ;;  %v818_v33 = vsel %vm814_vm1, %v800_v10, 0.0 }
 0x325   : > { %v841_v17 = vadd.f32 %v837_v11, %v832_v14  ;;  %v826_v37 = vadd.f32 %v822_v32, %v817_v35 }
 0x327   : > { %v794_v12 = vpop.permute.xlu0 %793  ;;  %v810_v13 = vpop.permute.xlu1 %809 }
 0x328   : > { %v838_v16 = vsel %vm834_vm15, %v810_v13, 0.0  ;;  %v830_v24 = vsel %vm829_vm14, %v794_v12, 0.0  ;;  %v823_v31 = vsel %vm819_vm0, %v810_v13, 0.0  ;;  %v815_v42 = vsel %vm814_vm1, %v794_v12, 0.0 }
 0x329   : > { %v842_v18 = vadd.f32 %v838_v16, %v833_v15  ;;  %v827_v34 = vadd.f32 %v823_v31, %v818_v33 }
 0x32b   : > { %v804_v19 = vpop.permute.xlu0 %803  ;;  %v796_v20 = vpop.permute.xlu1 %795  ;;  %v848_v21 = vpack.c.bf16 %v842_v18, %v841_v17  ;;  %v844_v40 = vpack.c.bf16 %v827_v34, %v826_v37 }
 0x32c   : > { %v835_v22 = vsel %vm834_vm15, %v804_v19, 0.0  ;;  %v831_v25 = vsel %vm829_vm14, %v796_v20, 0.0  ;;  %v820_v38 = vsel %vm819_vm0, %v804_v19, 0.0  ;;  %v816_v41 = vsel %vm814_vm1, %v796_v20, 0.0 }
 0x32d   : > { %1140 = vmatprep.subr.bf16.mxu1 %v848_v21  ;;  %v839_v28 = vadd.f32 %v835_v22, %v830_v24  ;;  %v824_v43 = vadd.f32 %v820_v38, %v815_v42 }
 0x32e   : > { %1141 = vmatpush3.bf16.msra.mxu1 %v848_v21 }
 0x32f   : > { %v806_v23 = vpop.permute.xlu1 %805 }
 0x330   : > { %v836_v26 = vsel %vm834_vm15, %v806_v23, 0.0  ;;  %v821_v36 = vsel %vm819_vm0, %v806_v23, 0.0 }
 0x331   : > { %v840_v29 = vadd.f32 %v836_v26, %v831_v25  ;;  %v825_v39 = vadd.f32 %v821_v36, %v816_v41 }
 0x333   : > { %v847_v30 = vpack.c.bf16 %v840_v29, %v839_v28  ;;  %v843_v44 = vpack.c.bf16 %v825_v39, %v824_v43 }
 0x335   : > { %1142 = vmatprep.subr.bf16.mxu1 %v847_v30 }
 0x336   : > { %1143 = vmatpush3.bf16.msra.mxu1 %v847_v30 }
 0x337   : > { %1144 = vmatprep.subr.bf16.mxu1 %v846_v61 }
 0x338   : > { %v860_v46 = vpop.permute.xlu0 %859 }
 0x33a   : > { %1145 = vmatpush3.bf16.msra.mxu1 %v846_v61 }
 0x33b   : > { %1146 = vmatprep.subr.bf16.mxu1 %v1504_v63 }
 0x33c   : > { %v865_v47 = vpop.permute.xlu1 %864  ;;  %v870_v48 = vpop.permute.xlu0 %869 }
 0x33e   : > { %1147 = vmatpush3.bf16.msra.mxu1 %v1504_v63 }
 0x33f   : > { %1148 = vmatprep.subr.bf16.mxu1 %v844_v40 }
 0x340   : > { %v875_v54 = vpop.permute.xlu1 %874 }
 0x342   : > { %1149 = vmatpush3.bf16.msra.mxu1 %v844_v40 }
 0x343   : > { %1150 = vmatprep.subr.bf16.mxu1 %v843_v44 }
 0x346   : > { %1151 = vmatpush3.bf16.msra.mxu1 %v843_v44 }
 0x349   : > { %1153 = vmatmul.mubr.msk.bf16.vlgmr.msra.gmra.mxu1 %vm887_vm13, %v1225_v45 }
 0x409   : > { %v1154_v49 = vpop.f32.mrf.mxu1 }
 0x40a   : > { %v937_v50 = vadd.f32 %v1154_v49, %v870_v48 }
 0x40b   : > { %v928_v51 = vpop.f32.mrf.mxu1 }
 0x40c   : > { %v945_v52 = vmax.f32 %v937_v50, 0.0  ;;  %v929_v53 = vadd.f32 %v928_v51, %v860_v46 }
 0x40d   : > { %v1155_v55 = vpop.f32.mrf.mxu1 }
 0x40e   : > { %949 = vst [vmem:[%s323_s13 + $0x10] sm:$0xff] %v945_v52  ;;  %v943_v56 = vmax.f32 %v929_v53, 0.0  ;;  %v940_v57 = vadd.f32 %v1155_v55, %v875_v54 }
 0x40f   : > { %v931_v58 = vpop.f32.mrf.mxu1 }
 0x410   : > { %947 = vst [vmem:[%s323_s13] sm:$0xff] %v943_v56  ;;  %v946_v59 = vmax.f32 %v940_v57, 0.0  ;;  %v932_v60 = vadd.f32 %v931_v58, %v865_v47 }
 0x412   : > { %950 = vst [vmem:[%s323_s13 + $0x18] sm:$0xff] %v946_v59  ;;  %v944_v61 = vmax.f32 %v932_v60, 0.0 }
 0x414   : > { %948 = vst [vmem:[%s323_s13 + $0x8] sm:$0xff] %v944_v61 }
 0x415   : > { %1239 = shalt.err (!%p1236_p5)
}
 0x416   : > { %s1240_s23 = scalar_lea.hbm %s1548_s16, 512  ;;  %s1244_s13 = scalar_lea.hbm %s1598_s7, 1024 }
 0x417   : > { %p1241_p7 = scmp.ne.s32.totalorder %s1548_s16, %s1240_s23  ;;  %p1245_p12 = scmp.lt.s32.totalorder %s1548_s16, %s1598_s7 }
 0x418   : > { %p1246_p13 = scmp.lt.s32.totalorder %s1244_s13, %s1240_s23 }
 0x419   : > { %p1242_p10 = pnand %p1241_p7, %p1375_p6 }
 0x41a   : > { %p1247_p0 = por %p1246_p13, %p1245_p12 }
 0x41b   : > { %p1243_p11 = pneg %p1242_p10 }
 0x41d   : > { %p1248_p1 = pnand %p1247_p0, %p1243_p11 }
 0x41f   : > { %1251 = shalt.err (!%p1248_p1)
}
 0x420   : > { %s1294_s18 = smov 128   ;;  %s1295_s20 = smov 256  }
 0x421   : > { %s1296_s28 = smov 8  }
 0x422   : > { %1159 = dma.vmem_to_hbm [thread:$0]  (%p1375_p6), %s1543_s14, 512, %s1548_s16, %s952_s19, %s1294_s18, %s1295_s20, %s1296_s28  }
 0x423 PF: > { %s979_s21 = sand.u32 1, %s1274_s24   ;;  %p1162_p2 = pnand %p1034_p9, %p1379_p8 }
 0x424   : > { %s980_s22 = scalar_lea.sflag [#allocation4], %s979_s21 }
 0x425   : > { %p1163_p3 = pneg %p1162_p2 }
 0x427   : > { %1269 = dma.done.wait (%p1163_p3), %s980_s22, 512  }
 0x428   : > { %1271 = vsyncadd (%p1163_p3), %s980_s22, 4294966784  ;;  %p17_p4 = scmp.ge.s32.totalorder %s1360_s30, 4   ;;  %s1601_s24 = smov %s1278_s25 }
 0x429   : > { %s1602_s25 = smov %s1282_s26  ;;  %s1603_s26 = smov %s1373_s10 }
 0x42a   : > { %s1604_s27 = smov %s1360_s30  ;;  %19 = sbr.rel (!%p17_p4) target bundleno = 3 (0x3), region = 129 }
 0x42f   :  { %985 = vsyncpa [#allocation4], 1 }
 0x430   :  { %987 = vsyncpa [#allocation4 + $0x1], 1 }

</bundles_post_ra>
